<compile_context>
chip_gen: v7x
topology: tpu7x:2x2x1
jax: 0.10.0
libtpu: 0.0.40
codegen_flags: <defaults>
</compile_context>

<pallas_src>
import functools

import jax
import jax.numpy as jnp
from jax.experimental import pallas as pl
from jax.experimental.pallas import tpu as pltpu

_LANES = 128                 # vreg lane width
_MAX_LANE_WIDTH = 1024       # cap on the lane-dense last dim (multiple of 128)
_MIN_GRID_STEPS = 8          # >= ~4 steps per TC on 2-TC parts -> DMA overlap


def _device_kind():
    try:
        return jax.devices()[0].device_kind.lower()
    except Exception:  # pragma: no cover - defensive only
        return ""


_KIND = _device_kind()
_NEW_GEN = ("v6" in _KIND) or ("v7" in _KIND)
# Per-tile byte budget.  With double-buffered input + output there are ~4 live
# tiles: 4 x 4 MiB = 16 MiB (< 32 MiB scoped default on v6e/v7x);
# 4 x 2 MiB = 8 MiB (< 16 MiB scoped default on v5e / unknown chips).
_TILE_BUDGET_BYTES = (4 << 20) if _NEW_GEN else (2 << 20)
# bf16 VPU/EUP exists on v6e/v7x only; v5e (and unknown) compute in f32.
_BF16_NATIVE = _NEW_GEN


def _sigmoid_kernel(x_ref, o_ref, *, compute_dtype):
    x = x_ref[...]
    if x.dtype != compute_dtype:
        x = x.astype(compute_dtype)
    # exp(-x) saturates correctly: +inf -> sigmoid 0, 0 -> sigmoid 1.
    denom = 1.0 + jnp.exp(-x)                      # exp issues on the EUP
    if compute_dtype == jnp.float32 and o_ref.dtype != jnp.float32:
        # f32 compute, narrow output (v5e bf16 path): EUP approx reciprocal is
        # well below bf16 ulp and keeps the VALU free.
        y = pl.reciprocal(denom, approx=True)
    else:
        y = 1.0 / denom                            # exact divide
    if y.dtype != o_ref.dtype:
        y = y.astype(o_ref.dtype)
    o_ref[...] = y


def _sublane(dtype):
    return {4: 8, 2: 16, 1: 32}.get(jnp.dtype(dtype).itemsize, 8)


def _pick_tile_r(rows, row_bytes, sub):
    """Largest sublane-aligned row tile <= budget that divides rows exactly."""
    if rows % sub != 0 or rows <= sub:
        return rows  # single full-extent block (only tiny/odd inputs hit this)
    budget = min(_TILE_BUDGET_BYTES, (rows * row_bytes) // _MIN_GRID_STEPS)
    budget = max(budget, sub * row_bytes)
    t = min(rows, max(sub, (budget // row_bytes) // sub * sub))
    while rows % t != 0:          # keep the grid exact (no ragged last block)
        t -= sub
    return t


def _choose_layout(n, dtype):
    """Pick (rows, c, pad, tile_r): a lane-dense (rows, c) slab for n elems."""
    sub = _sublane(dtype)
    itemsize = jnp.dtype(dtype).itemsize
    # Prefer a lane width (multiple of 128) that divides n exactly -> no pad
    # pass and no trailing slice in the wrapper.
    c = 0
    for k in range(_MAX_LANE_WIDTH // _LANES, 0, -1):
        if n % (_LANES * k) == 0:
            c = _LANES * k
            break
    if c:
        rows = n // c
        pad = 0
    else:
        # Ragged size: pad once, rows rounded to the sublane granularity.
        c = min(_MAX_LANE_WIDTH, _LANES * pl.cdiv(n, _LANES))
        rows = sub * pl.cdiv(pl.cdiv(n, c), sub)
        pad = rows * c - n
    tile_r = _pick_tile_r(rows, c * itemsize, sub)
    return rows, c, pad, tile_r


def _net_forward(blocks, x, fc1_w=None, fc1_b=None):
    """Pallas equivalent of Net.forward: returns sigmoid(x).

    `blocks`, `fc1_w`, `fc1_b` are accepted for signature parity but unused,
    exactly mirroring the PyTorch module's forward.
    """
    del blocks, fc1_w, fc1_b  # unused in the reference forward

    orig_shape = x.shape
    n = x.size
    rows, c, pad, tile_r = _choose_layout(n, x.dtype)

    flat = x.reshape(-1)
    if pad:
        flat = jnp.pad(flat, (0, pad))
    x2d = flat.reshape(rows, c)

    compute_dtype = jnp.float32
    if _BF16_NATIVE and x.dtype == jnp.bfloat16:
        compute_dtype = jnp.bfloat16

    out2d = pl.pallas_call(
        functools.partial(_sigmoid_kernel, compute_dtype=compute_dtype),
        out_shape=jax.ShapeDtypeStruct((rows, c), x.dtype),
        grid_spec=pltpu.PrefetchScalarGridSpec(
            num_scalar_prefetch=0,
            grid=(rows // tile_r,),
            in_specs=[pl.BlockSpec((tile_r, c), lambda i: (i, 0))],
            out_specs=pl.BlockSpec((tile_r, c), lambda i: (i, 0)),
        ),
        compiler_params=pltpu.CompilerParams(
            dimension_semantics=("parallel",)),
    )(x2d)

    if pad:
        return out2d.reshape(-1)[:n].reshape(orig_shape)
    return out2d.reshape(orig_shape)


# jit end-to-end so the surrounding reshape/pad/slice fuse with the call.
net_forward = jax.jit(_net_forward)


def make_params(input_length, nb_classes, key):
    """Deterministic init of the (unused-in-forward) fc1 Linear parameters."""
    kw, kb = jax.random.split(key)
    bound = 1.0 / jnp.sqrt(jnp.float32(input_length))
    w = jax.random.uniform(kw, (nb_classes, input_length), jnp.float32,
                           minval=-bound, maxval=bound)
    b = jax.random.uniform(kb, (nb_classes,), jnp.float32,
                           minval=-bound, maxval=bound)
    return w, b


if __name__ == "__main__":
    key = jax.random.PRNGKey(0)
    k_x, k_p, k_big, k_bf = jax.random.split(key, 4)

    input_length = 32
    nb_classes = 8
    batch = 2

    fc1_w, fc1_b = make_params(input_length, nb_classes, k_p)
    blocks = None  # unused by the reference forward

    # 1) Module-sized input (batch=2, input_length=32): ragged -> pad path.
    x = jax.random.normal(k_x, (batch, input_length), jnp.float32)
    out = jax.block_until_ready(net_forward(blocks, x, fc1_w, fc1_b))
    ref = jax.nn.sigmoid(x)
    assert out.shape == x.shape and out.dtype == x.dtype
    assert jnp.max(jnp.abs(out - ref)) < 1e-5

    # 2) Aligned f32 input: no-pad path, multi-step "parallel" pipelined grid.
    x_big = jax.random.normal(k_big, (1024, 1024), jnp.float32)
    out_big = jax.block_until_ready(net_forward(blocks, x_big))
    assert jnp.max(jnp.abs(out_big - jax.nn.sigmoid(x_big))) < 1e-5

    # 3) bf16 input: native-bf16 compute on v6e/v7x, f32 compute elsewhere.
    x_bf = jax.random.normal(k_bf, (64, 96), jnp.float32).astype(jnp.bfloat16)
    out_bf = jax.block_until_ready(net_forward(blocks, x_bf))
    ref_bf = jax.nn.sigmoid(x_bf.astype(jnp.float32))
    assert out_bf.shape == x_bf.shape and out_bf.dtype == jnp.bfloat16
    assert jnp.max(jnp.abs(out_bf.astype(jnp.float32) - ref_bf)) < 3e-2

    print("KERNEL_OK")
</pallas_src>

<mosaic_0001>
module attributes {stable_mosaic.version = 11 : i64} {
  func.func @_sigmoid_kernel(%arg0: i32, %arg1: memref<8x128xf32, #tpu.memory_space<vmem>>, %arg2: memref<8x128xf32, #tpu.memory_space<vmem>>) attributes {dimension_semantics = [#tpu.dimension_semantics<parallel>], iteration_bounds = array<i64: 1>, scalar_prefetch = 0 : i64, scratch_operands = 0 : i64, tpu.core_type = #tpu.core_type<tc>, window_params = [{transform_indices = @transform_0, window_bounds = array<i64: 8, 128>}, {transform_indices = @transform_1, window_bounds = array<i64: 8, 128>}]} {
    %c0 = arith.constant 0 : index
    %c0_0 = arith.constant 0 : index
    %0 = vector.load %arg1[%c0, %c0_0] : memref<8x128xf32, #tpu.memory_space<vmem>>, vector<8x128xf32>
    %cst = arith.constant 0.000000e+00 : f32
    %1 = vector.broadcast %cst : f32 to vector<8x128xf32>
    %2 = arith.subf %1, %0 : vector<8x128xf32>
    %3 = math.exp %2 : vector<8x128xf32>
    %cst_1 = arith.constant 1.000000e+00 : f32
    %4 = vector.broadcast %cst_1 : f32 to vector<8x128xf32>
    %5 = arith.addf %4, %3 : vector<8x128xf32>
    %cst_2 = arith.constant 1.000000e+00 : f32
    %6 = vector.broadcast %cst_2 : f32 to vector<8x128xf32>
    %7 = arith.divf %6, %5 : vector<8x128xf32>
    %c0_3 = arith.constant 0 : index
    %c0_4 = arith.constant 0 : index
    %8 = vector.load %arg2[%c0_3, %c0_4] : memref<8x128xf32, #tpu.memory_space<vmem>>, vector<8x128xf32>
    tpu.vector_store %arg2[%c0_3, %c0_4], %7 {strides = array<i32>} : memref<8x128xf32, #tpu.memory_space<vmem>>, vector<8x128xf32>,
    return
  }
  func.func @transform_0(%arg0: i32) -> (i32, i32) {
    %c0_i32 = arith.constant 0 : i32
    %c0_i32_0 = arith.constant 0 : i32
    return %arg0, %c0_i32 : i32, i32
  }
  func.func @transform_1(%arg0: i32) -> (i32, i32) {
    %c0_i32 = arith.constant 0 : i32
    %c0_i32_0 = arith.constant 0 : i32
    return %arg0, %c0_i32 : i32, i32
  }
}

</mosaic_0001>

<bundles_post_ra>
// kernel: _net_forward.1
= control target key start
LH: loop header
LB: loop body
LE: loop exit
PB: predicated region body
PF: predicated region fallthrough
CT: control target
= control target key end

     0   :  { %s40_s0 = inlined_call_operand.vmem [shape: f32[8,128], index: 0, kind: input, shape index: {}]   ;;  %s41_s1 = inlined_call_operand.vmem [shape: f32[8,128], index: 1, kind: output, shape index: {}]  }
   0x1   :  { %v8_v0 = vld [vmem:[%s40_s0] sm:$0xff] }
   0x2   :  { %v9_v1 = vsub.f32 0.0, %v8_v0 }
   0x4   :  { %v10_v2 = vmul.f32 1.442695, %v9_v1 }
   0x6   :  { %20 = vpow2.f32 %v10_v2 }
  0x10   :  { %v21_v3 = vpop.eup %20 }
  0x11   :  { %v12_v4 = vadd.f32 1.0, %v21_v3 }
  0x13   :  { %22 = vrcp.f32 %v12_v4 }
  0x1d   :  { %v23_v5 = vpop.eup %22 }
  0x1e   :  { %15 = vst [vmem:[%s41_s1] sm:$0xff] %v23_v5 }

</bundles_post_ra>
